<compile_context>
chip_gen: v6e
topology: v6e:2x2x1
jax: 0.10.0
libtpu: 0.0.40
codegen_flags: <defaults>
</compile_context>

<pallas_src>
import functools

import jax
import jax.numpy as jnp
from jax.experimental import pallas as pl
from jax.experimental.pallas import tpu as pltpu

# ----------------------------- config ---------------------------------------
DIM = 32          # model dim
HEADS = 4         # number of heads
DIM_HEAD = 16     # per-head dim
INNER = HEADS * DIM_HEAD   # 64
SEQ = 8           # sequence length
BATCH = 2
LN_EPS = 1e-5
NEG_BIG = -1e30   # finite "-inf" for the cross-batch mask (f32 only!)


def _block_diag_mask(heads, rows, group):
    """(heads, rows, rows) bool mask: True where row & col are in the same
    length-`group` block.  Rows are assumed ordered (batch, seq) -- which is
    exactly how the wrapper flattens x -- so this masks cross-batch scores."""
    r = jax.lax.broadcasted_iota(jnp.int32, (heads, rows, rows), 1)
    c = jax.lax.broadcasted_iota(jnp.int32, (heads, rows, rows), 2)
    if group & (group - 1) == 0:                      # power of two -> shift
        sh = group.bit_length() - 1
        return (r >> sh) == (c >> sh)
    return (r // group) == (c // group)


def attention_kernel(x_ref, params_ref, w_ref, o_ref, *,
                     batch, seq, dim, heads, dim_head, scale, eps):
    """Whole problem in one invocation (no grid).

    x_ref:      (B*N, D)                 activations (rows ordered batch,seq)
    params_ref: (3, D)                   row 0 = LN gamma, 1 = LN beta, 2 = out bias
    w_ref:      (4, H, D, dh)            [0]=Wq  [1]=Wk  [2]=Wv  [3]=Wout^T per head
    o_ref:      (B*N, D)
    """
    bn = batch * seq

    gamma = params_ref[0:1, :]                         # (1, D)
    beta = params_ref[1:2, :]
    b_out = params_ref[2:3, :]

    # ---- LayerNorm over last dim (f32 on every generation) ----
    x = x_ref[...]                                     # (B*N, D)
    mean = jnp.mean(x, axis=-1, keepdims=True)
    xc = x - mean
    var = jnp.mean(xc * xc, axis=-1, keepdims=True)
    xn = xc * jax.lax.rsqrt(var + eps) * gamma + beta  # (B*N, D)

    # ---- Q/K/V projections as batched (per-head) matmuls ----
    # Heads are the leading batch dim, so the MXU output is already
    # head-separated: no lane slices, no stack-heads relayout.
    xn3 = jnp.broadcast_to(xn[None, :, :], (heads, bn, dim))       # (H, B*N, D)
    q = jnp.einsum('hnc,hcf->hnf', xn3, w_ref[0],
                   preferred_element_type=jnp.float32)             # (H, B*N, dh)
    k = jnp.einsum('hnc,hcf->hnf', xn3, w_ref[1],
                   preferred_element_type=jnp.float32)
    v = jnp.einsum('hnc,hcf->hnf', xn3, w_ref[2],
                   preferred_element_type=jnp.float32)

    # ---- Scores (flash-style batched matmul) + cross-batch mask ----
    dots = jnp.einsum('hnd,hmd->hnm', q, k,
                      preferred_element_type=jnp.float32) * scale  # (H, B*N, B*N)
    if batch > 1:
        # Rows within a head span all batches; mask cross-batch blocks.
        dots = jnp.where(_block_diag_mask(heads, bn, seq), dots, NEG_BIG)

    # ---- Numerically stable softmax; exact reciprocal on the EUP ----
    m = jnp.max(dots, axis=-1, keepdims=True)
    e = jnp.exp(dots - m)
    s = jnp.sum(e, axis=-1, keepdims=True)
    attn = e * pl.reciprocal(s, approx=False)
    # dropout(p=0.0) == identity

    out = jnp.einsum('hnm,hmd->hnd', attn, v,
                     preferred_element_type=jnp.float32)           # (H, B*N, dh)

    # ---- Output projection: per-head matmul with Wout^T, reduce over heads ----
    # w_ref[3][h, c, d] == w_out[h*dh + d, c]
    y3 = jnp.einsum('hnd,hcd->hnc', out, w_ref[3],
                    preferred_element_type=jnp.float32)            # (H, B*N, D)
    y = y3[0]
    for h in range(1, heads):                                      # static unroll
        y = y + y3[h]
    y = y + b_out                                                  # (B*N, D)

    # NOTE: last dim D=32 < 128 lanes -> masked partial stores; negligible at
    # this size (see review), revisit if B*N*D grows.
    o_ref[...] = y.astype(o_ref.dtype)


def prepare_params(gamma, beta, b_out, w_qkv, w_out, *, heads, dim_head):
    """One-time, init-time parameter repacking (runs OUTSIDE the jitted
    forward, so there is zero per-call wrapper compute)."""
    dim = w_qkv.shape[0]
    inner = heads * dim_head
    assert w_qkv.shape == (dim, 3 * inner) and w_out.shape == (inner, dim)

    params = jnp.concatenate([jnp.reshape(gamma, (1, dim)),
                              jnp.reshape(beta, (1, dim)),
                              jnp.reshape(b_out, (1, dim))], axis=0)  # (3, D)

    def to_heads(w):                       # (D, H*dh) -> (H, D, dh)
        return w.reshape(dim, heads, dim_head).transpose(1, 0, 2)

    wq = to_heads(w_qkv[:, 0 * inner:1 * inner])
    wk = to_heads(w_qkv[:, 1 * inner:2 * inner])
    wv = to_heads(w_qkv[:, 2 * inner:3 * inner])
    wo_t = w_out.reshape(heads, dim_head, dim).transpose(0, 2, 1)     # (H, D, dh)

    w_packed = jnp.stack([wq, wk, wv, wo_t], axis=0)                  # (4, H, D, dh)
    return params, w_packed


@jax.jit
def attention_forward(x, params, w_packed):
    B, N, D = x.shape
    _, heads, d2, dim_head = w_packed.shape
    assert d2 == D and params.shape == (3, D)

    x2 = x.reshape(B * N, D)           # free bitcast; rows ordered (batch, seq)
    bn = B * N

    kernel = functools.partial(
        attention_kernel, batch=B, seq=N, dim=D, heads=heads,
        dim_head=dim_head, scale=dim_head ** (-0.5), eps=LN_EPS)

    flops = 2 * (3 * heads * bn * D * dim_head        # QKV projections
                 + 2 * heads * bn * bn * dim_head     # scores + attn@V
                 + heads * bn * dim_head * D)         # output projection
    cost = pl.CostEstimate(
        flops=flops,
        transcendentals=heads * bn * bn + 2 * bn,     # exp + rsqrt/recip
        bytes_accessed=4 * (x2.size + params.size + w_packed.size + x2.size))

    # Single invocation (no grid): one DMA per operand, one fixed-overhead
    # step.  Deliberately NOT split across TensorCores at this size.
    y2 = pl.pallas_call(
        kernel,
        out_shape=jax.ShapeDtypeStruct((bn, D), x.dtype),
        in_specs=[pl.BlockSpec(memory_space=pltpu.MemorySpace.VMEM)] * 3,
        out_specs=pl.BlockSpec(memory_space=pltpu.MemorySpace.VMEM),
        cost_estimate=cost,
    )(x2, params, w_packed)

    return y2.reshape(B, N, D)


def reference_forward(x, gamma, beta, w_qkv, w_out, b_out):
    """Pure-JAX reference mirroring the PyTorch module."""
    mean = jnp.mean(x, axis=-1, keepdims=True)
    var = jnp.mean((x - mean) ** 2, axis=-1, keepdims=True)
    xn = (x - mean) / jnp.sqrt(var + LN_EPS) * gamma + beta
    qkv = xn @ w_qkv                                   # (B, N, 3*INNER)
    q, k, v = jnp.split(qkv, 3, axis=-1)

    def to_heads(t):
        B, N, _ = t.shape
        return t.reshape(B, N, HEADS, DIM_HEAD).transpose(0, 2, 1, 3)

    q, k, v = map(to_heads, (q, k, v))
    dots = jnp.einsum("bhnd,bhmd->bhnm", q, k) * (DIM_HEAD ** -0.5)
    attn = jax.nn.softmax(dots, axis=-1)
    out = jnp.einsum("bhnm,bhmd->bhnd", attn, v)
    out = out.transpose(0, 2, 1, 3).reshape(x.shape[0], x.shape[1], INNER)
    return out @ w_out + b_out


if __name__ == "__main__":
    key = jax.random.PRNGKey(0)
    k_x, k_qkv, k_wo, k_bo = jax.random.split(key, 4)

    x = jax.random.normal(k_x, (BATCH, SEQ, DIM), dtype=jnp.float32)

    # deterministic parameter init (synthetic; no checkpoint load)
    gamma = jnp.ones((DIM,), dtype=jnp.float32)        # nn.LayerNorm default
    beta = jnp.zeros((DIM,), dtype=jnp.float32)
    w_qkv = jax.random.normal(k_qkv, (DIM, 3 * INNER), dtype=jnp.float32) * 0.05
    w_out = jax.random.normal(k_wo, (INNER, DIM), dtype=jnp.float32) * 0.05
    b_out = jax.random.normal(k_bo, (DIM,), dtype=jnp.float32) * 0.01

    # one-time repack (outside jit -> no per-call wrapper compute)
    params, w_packed = prepare_params(gamma, beta, b_out, w_qkv, w_out,
                                      heads=HEADS, dim_head=DIM_HEAD)

    y = attention_forward(x, params, w_packed)
    y = jax.block_until_ready(y)

    y_ref = reference_forward(x, gamma, beta, w_qkv, w_out, b_out)
    assert y.shape == (BATCH, SEQ, DIM)
    assert jnp.allclose(y, y_ref, atol=1e-3, rtol=1e-3), (
        f"mismatch vs reference, max abs err={jnp.max(jnp.abs(y - y_ref))}")

    print("KERNEL_OK")
</pallas_src>

<mosaic_0001>
module attributes {stable_mosaic.version = 11 : i64} {
  func.func @attention_kernel(%arg0: memref<16x32xf32, #tpu.memory_space<vmem>>, %arg1: memref<3x32xf32, #tpu.memory_space<vmem>>, %arg2: memref<4x4x32x16xf32, #tpu.memory_space<vmem>>, %arg3: memref<16x32xf32, #tpu.memory_space<vmem>>) attributes {dimension_semantics = [], scalar_prefetch = 0 : i64, scratch_operands = 0 : i64, tpu.core_type = #tpu.core_type<tc>} {
    %c0 = arith.constant 0 : index
    %c0_0 = arith.constant 0 : index
    %0 = vector.load %arg1[%c0, %c0_0] : memref<3x32xf32, #tpu.memory_space<vmem>>, vector<1x32xf32>
    %c1 = arith.constant 1 : index
    %c0_1 = arith.constant 0 : index
    %1 = vector.load %arg1[%c1, %c0_1] : memref<3x32xf32, #tpu.memory_space<vmem>>, vector<1x32xf32>
    %c2 = arith.constant 2 : index
    %c0_2 = arith.constant 0 : index
    %2 = vector.load %arg1[%c2, %c0_2] : memref<3x32xf32, #tpu.memory_space<vmem>>, vector<1x32xf32>
    %c0_3 = arith.constant 0 : index
    %c0_4 = arith.constant 0 : index
    %3 = vector.load %arg0[%c0_3, %c0_4] : memref<16x32xf32, #tpu.memory_space<vmem>>, vector<16x32xf32>
    %cst = arith.constant dense<0.000000e+00> : vector<16xf32>
    %4 = vector.multi_reduction <add>, %3, %cst [1] : vector<16x32xf32> to vector<16xf32>
    %5 = vector.shape_cast %4 : vector<16xf32> to vector<16x1xf32>
    %cst_5 = arith.constant 3.200000e+01 : f32
    %6 = vector.broadcast %cst_5 : f32 to vector<16x1xf32>
    %7 = arith.divf %5, %6 : vector<16x1xf32>
    %8 = vector.broadcast %7 : vector<16x1xf32> to vector<16x32xf32>
    %9 = arith.subf %3, %8 : vector<16x32xf32>
    %10 = arith.mulf %9, %9 : vector<16x32xf32>
    %cst_6 = arith.constant dense<0.000000e+00> : vector<16xf32>
    %11 = vector.multi_reduction <add>, %10, %cst_6 [1] : vector<16x32xf32> to vector<16xf32>
    %12 = vector.shape_cast %11 : vector<16xf32> to vector<16x1xf32>
    %cst_7 = arith.constant 3.200000e+01 : f32
    %13 = vector.broadcast %cst_7 : f32 to vector<16x1xf32>
    %14 = arith.divf %12, %13 : vector<16x1xf32>
    %cst_8 = arith.constant 9.99999974E-6 : f32
    %15 = vector.broadcast %cst_8 : f32 to vector<16x1xf32>
    %16 = arith.addf %14, %15 : vector<16x1xf32>
    %17 = math.rsqrt %16 : vector<16x1xf32>
    %18 = vector.broadcast %17 : vector<16x1xf32> to vector<16x32xf32>
    %19 = arith.mulf %9, %18 : vector<16x32xf32>
    %20 = vector.broadcast %0 : vector<1x32xf32> to vector<16x32xf32>
    %21 = arith.mulf %19, %20 : vector<16x32xf32>
    %22 = vector.broadcast %1 : vector<1x32xf32> to vector<16x32xf32>
    %23 = arith.addf %21, %22 : vector<16x32xf32>
    %24 = vector.shape_cast %23 : vector<16x32xf32> to vector<1x16x32xf32>
    %25 = vector.shape_cast %24 : vector<1x16x32xf32> to vector<1x16x32xf32>
    %26 = vector.broadcast %25 : vector<1x16x32xf32> to vector<4x16x32xf32>
    %c0_9 = arith.constant 0 : index
    %c0_10 = arith.constant 0 : index
    %c0_11 = arith.constant 0 : index
    %c0_12 = arith.constant 0 : index
    %27 = vector.load %arg2[%c0_9, %c0_10, %c0_11, %c0_12] : memref<4x4x32x16xf32, #tpu.memory_space<vmem>>, vector<1x4x32x16xf32>
    %28 = vector.shape_cast %27 : vector<1x4x32x16xf32> to vector<4x32x16xf32>
    "tpu.trace_start"() <{level = 10 : i32, message = "hnc,hcf->hnf"}> : () -> ()
    %cst_13 = arith.constant dense<0.000000e+00> : vector<4x16x16xf32>
    %29 = tpu.matmul %26, %28, %cst_13 {dimension_numbers = #tpu.dot_dimension_numbers<[2], [1], [1], [2], [0, 0, 0, 1, 1, 2], [0], [0]>} : vector<4x16x32xf32>, vector<4x32x16xf32>, vector<4x16x16xf32> -> vector<4x16x16xf32>
    "tpu.trace_stop"() : () -> ()
    %c1_14 = arith.constant 1 : index
    %c0_15 = arith.constant 0 : index
    %c0_16 = arith.constant 0 : index
    %c0_17 = arith.constant 0 : index
    %30 = vector.load %arg2[%c1_14, %c0_15, %c0_16, %c0_17] : memref<4x4x32x16xf32, #tpu.memory_space<vmem>>, vector<1x4x32x16xf32>
    %31 = vector.shape_cast %30 : vector<1x4x32x16xf32> to vector<4x32x16xf32>
    "tpu.trace_start"() <{level = 10 : i32, message = "hnc,hcf->hnf"}> : () -> ()
    %cst_18 = arith.constant dense<0.000000e+00> : vector<4x16x16xf32>
    %32 = tpu.matmul %26, %31, %cst_18 {dimension_numbers = #tpu.dot_dimension_numbers<[2], [1], [1], [2], [0, 0, 0, 1, 1, 2], [0], [0]>} : vector<4x16x32xf32>, vector<4x32x16xf32>, vector<4x16x16xf32> -> vector<4x16x16xf32>
    "tpu.trace_stop"() : () -> ()
    %c2_19 = arith.constant 2 : index
    %c0_20 = arith.constant 0 : index
    %c0_21 = arith.constant 0 : index
    %c0_22 = arith.constant 0 : index
    %33 = vector.load %arg2[%c2_19, %c0_20, %c0_21, %c0_22] : memref<4x4x32x16xf32, #tpu.memory_space<vmem>>, vector<1x4x32x16xf32>
    %34 = vector.shape_cast %33 : vector<1x4x32x16xf32> to vector<4x32x16xf32>
    "tpu.trace_start"() <{level = 10 : i32, message = "hnc,hcf->hnf"}> : () -> ()
    %cst_23 = arith.constant dense<0.000000e+00> : vector<4x16x16xf32>
    %35 = tpu.matmul %26, %34, %cst_23 {dimension_numbers = #tpu.dot_dimension_numbers<[2], [1], [1], [2], [0, 0, 0, 1, 1, 2], [0], [0]>} : vector<4x16x32xf32>, vector<4x32x16xf32>, vector<4x16x16xf32> -> vector<4x16x16xf32>
    "tpu.trace_stop"() : () -> ()
    "tpu.trace_start"() <{level = 10 : i32, message = "hnd,hmd->hnm"}> : () -> ()
    %cst_24 = arith.constant dense<0.000000e+00> : vector<4x16x16xf32>
    %36 = tpu.matmul %29, %32, %cst_24 {dimension_numbers = #tpu.dot_dimension_numbers<[2], [2], [1], [1], [0, 0, 0, 1, 1, 1], [0], [0]>} : vector<4x16x16xf32>, vector<4x16x16xf32>, vector<4x16x16xf32> -> vector<4x16x16xf32>
    "tpu.trace_stop"() : () -> ()
    %cst_25 = arith.constant 2.500000e-01 : f32
    %37 = vector.broadcast %cst_25 : f32 to vector<4x16x16xf32>
    %38 = arith.mulf %36, %37 : vector<4x16x16xf32>
    %39 = tpu.iota {dimensions = array<i32: 1>} : vector<4x16x16xi32>
    %40 = tpu.iota {dimensions = array<i32: 2>} : vector<4x16x16xi32>
    %c3_i32 = arith.constant 3 : i32
    %41 = vector.broadcast %c3_i32 : i32 to vector<4x16x16xi32>
    %42 = arith.shrsi %39, %41 : vector<4x16x16xi32>
    %c3_i32_26 = arith.constant 3 : i32
    %43 = vector.broadcast %c3_i32_26 : i32 to vector<4x16x16xi32>
    %44 = arith.shrsi %40, %43 : vector<4x16x16xi32>
    %45 = arith.cmpi eq, %42, %44 : vector<4x16x16xi32>
    %cst_27 = arith.constant -1.000000e+30 : f32
    %46 = vector.broadcast %cst_27 : f32 to vector<4x16x16xf32>
    %47 = arith.select %45, %38, %46 : vector<4x16x16xi1>, vector<4x16x16xf32>
    %cst_28 = arith.constant dense<0xFF800000> : vector<4x16xf32>
    %48 = vector.multi_reduction <maximumf>, %47, %cst_28 [2] : vector<4x16x16xf32> to vector<4x16xf32>
    %49 = vector.shape_cast %48 : vector<4x16xf32> to vector<4x16x1xf32>
    %50 = vector.broadcast %49 : vector<4x16x1xf32> to vector<4x16x16xf32>
    %51 = arith.subf %47, %50 : vector<4x16x16xf32>
    %52 = math.exp %51 : vector<4x16x16xf32>
    %cst_29 = arith.constant dense<0.000000e+00> : vector<4x16xf32>
    %53 = vector.multi_reduction <add>, %52, %cst_29 [2] : vector<4x16x16xf32> to vector<4x16xf32>
    %54 = vector.shape_cast %53 : vector<4x16xf32> to vector<4x16x1xf32>
    %55 = tpu.reciprocal %54 : vector<4x16x1xf32> -> vector<4x16x1xf32>
    %56 = vector.broadcast %55 : vector<4x16x1xf32> to vector<4x16x16xf32>
    %57 = arith.mulf %52, %56 : vector<4x16x16xf32>
    "tpu.trace_start"() <{level = 10 : i32, message = "hnm,hmd->hnd"}> : () -> ()
    %cst_30 = arith.constant dense<0.000000e+00> : vector<4x16x16xf32>
    %58 = tpu.matmul %57, %35, %cst_30 {dimension_numbers = #tpu.dot_dimension_numbers<[2], [1], [1], [2], [0, 0, 0, 1, 1, 2], [0], [0]>} : vector<4x16x16xf32>, vector<4x16x16xf32>, vector<4x16x16xf32> -> vector<4x16x16xf32>
    "tpu.trace_stop"() : () -> ()
    %c3 = arith.constant 3 : index
    %c0_31 = arith.constant 0 : index
    %c0_32 = arith.constant 0 : index
    %c0_33 = arith.constant 0 : index
    %59 = vector.load %arg2[%c3, %c0_31, %c0_32, %c0_33] : memref<4x4x32x16xf32, #tpu.memory_space<vmem>>, vector<1x4x32x16xf32>
    %60 = vector.shape_cast %59 : vector<1x4x32x16xf32> to vector<4x32x16xf32>
    "tpu.trace_start"() <{level = 10 : i32, message = "hnd,hcd->hnc"}> : () -> ()
    %cst_34 = arith.constant dense<0.000000e+00> : vector<4x16x32xf32>
    %61 = tpu.matmul %58, %60, %cst_34 {dimension_numbers = #tpu.dot_dimension_numbers<[2], [2], [1], [1], [0, 0, 0, 1, 1, 1], [0], [0]>} : vector<4x16x16xf32>, vector<4x32x16xf32>, vector<4x16x32xf32> -> vector<4x16x32xf32>
    "tpu.trace_stop"() : () -> ()
    %62 = vector.extract_strided_slice %61 {offsets = [0, 0, 0], sizes = [1, 16, 32], strides = [1, 1, 1]} : vector<4x16x32xf32> to vector<1x16x32xf32>
    %63 = vector.shape_cast %62 : vector<1x16x32xf32> to vector<16x32xf32>
    %64 = vector.extract_strided_slice %61 {offsets = [1, 0, 0], sizes = [1, 16, 32], strides = [1, 1, 1]} : vector<4x16x32xf32> to vector<1x16x32xf32>
    %65 = vector.shape_cast %64 : vector<1x16x32xf32> to vector<16x32xf32>
    %66 = arith.addf %63, %65 : vector<16x32xf32>
    %67 = vector.extract_strided_slice %61 {offsets = [2, 0, 0], sizes = [1, 16, 32], strides = [1, 1, 1]} : vector<4x16x32xf32> to vector<1x16x32xf32>
    %68 = vector.shape_cast %67 : vector<1x16x32xf32> to vector<16x32xf32>
    %69 = arith.addf %66, %68 : vector<16x32xf32>
    %70 = vector.extract_strided_slice %61 {offsets = [3, 0, 0], sizes = [1, 16, 32], strides = [1, 1, 1]} : vector<4x16x32xf32> to vector<1x16x32xf32>
    %71 = vector.shape_cast %70 : vector<1x16x32xf32> to vector<16x32xf32>
    %72 = arith.addf %69, %71 : vector<16x32xf32>
    %73 = vector.broadcast %2 : vector<1x32xf32> to vector<16x32xf32>
    %74 = arith.addf %72, %73 : vector<16x32xf32>
    %c0_35 = arith.constant 0 : index
    %c0_36 = arith.constant 0 : index
    %75 = vector.load %arg3[%c0_35, %c0_36] : memref<16x32xf32, #tpu.memory_space<vmem>>, vector<16x32xf32>
    tpu.vector_store %arg3[%c0_35, %c0_36], %74 {strides = array<i32>} : memref<16x32xf32, #tpu.memory_space<vmem>>, vector<16x32xf32>,
    return
  }
}

</mosaic_0001>

<bundles_post_ra>
// kernel: attention_forward.1
= control target key start
LH: loop header
LB: loop body
LE: loop exit
PB: predicated region body
PF: predicated region fallthrough
CT: control target
= control target key end

     0   :  { %vm20_vm0 = vcmask 261120   ;;  %s3185_s0 = inlined_call_operand.vmem [shape: f32[16,32], index: 0, kind: input, shape index: {}]   ;;  %s3186_s1 = inlined_call_operand.vmem [shape: f32[3,32], index: 1, kind: input, shape index: {}]   ;;  %s3187_s2 = inlined_call_operand.vmem [shape: f32[4,4,32,16], index: 2, kind: input, shape index: {}]   ;;  %s3188_s3 = inlined_call_operand.hbm [shape: f32[16,32], index: 3, kind: output, shape index: {}]  }
   0x1   :  { %v18_v0 = vld [vmem:[%s3185_s0] sm:$0xff]  ;;  %v19_v1 = vld [vmem:[%s3185_s0 + $0x8] sm:$0xff] }
   0x2   :  { %8 = vsyncpa [#allocation3], 0  ;;  %v21_v2 = vsel %vm20_vm0, %v18_v0, 0.0  ;;  %v24_v3 = vsel %vm20_vm0, %v19_v1, 0.0  ;;  %v63_v14 = vld [vmem:[%s3187_s2 + $0x18] sm:$0xff]  ;;  %v62_v16 = vld [vmem:[%s3187_s2 + $0x10] sm:$0xff] }
   0x3   :  { %22 = vadd.xlane.f32.xlu0 %v21_v2  ;;  %v67_v15 = vld [vmem:[%s3187_s2 + $0x38] sm:$0xff]  ;;  %2473 = vmatprep.subr.mxu0 %v63_v14  ;;  %v66_v17 = vld [vmem:[%s3187_s2 + $0x30] sm:$0xff]  ;;  %v61_v18 = vld [vmem:[%s3187_s2 + $0x8] sm:$0xff]  ;;  %vm1016_vm1 = vcmask 130048   ;;  %s2766_s9 = smov [#allocation2]  }
   0x4   :  { %2484 = vmatprep.subr.mxu1 %v67_v15  ;;  %2474 = vmatpush3.msra.mxu0 %v63_v14  ;;  %v65_v19 = vld [vmem:[%s3187_s2 + $0x28] sm:$0xff]  ;;  %v60_v20 = vld [vmem:[%s3187_s2] sm:$0xff]  ;;  %v71_v22 = vld [vmem:[%s3187_s2 + $0x58] sm:$0xff]  ;;  %s2211_s10 = sshll.u32 %s2766_s9, 4  ;;  %s2212_s10 = int_to_ptr.vmem [resolvable:$true] %s2211_s10 }
   0x5   :  { %2485 = vmatpush3.msra.mxu1 %v67_v15  ;;  %2475 = vmatprep.subr.mxu0 %v62_v16  ;;  %v64_v21 = vld [vmem:[%s3187_s2 + $0x20] sm:$0xff]  ;;  %v75_v23 = vld [vmem:[%s3187_s2 + $0x78] sm:$0xff]  ;;  %v70_v40 = vld [vmem:[%s3187_s2 + $0x50] sm:$0xff]  ;;  %s2744_s11 = scalar_lea.vmem %s2212_s10, 256  ;;  %p2749_p1 = scmp.lt.s32.totalorder %s2212_s10, %s2212_s10 }
   0x6   :  { %2486 = vmatprep.subr.mxu1 %v66_v17  ;;  %2476 = vmatpush3.msra.mxu0 %v62_v16  ;;  %v2222_v31 = vld [vmem:[%s3186_s1] ss:$0 sm:$0xff]  ;;  %v2223_v33 = vld [vmem:[%s3186_s1 + $0x1] ss:$0 sm:$0xff]  ;;  %v74_v41 = vld [vmem:[%s3187_s2 + $0x70] sm:$0xff]  ;;  %p2745_p0 = scmp.ne.s32.totalorder %s2212_s10, %s2744_s11  ;;  %p2750_p2 = scmp.lt.s32.totalorder %s2744_s11, %s2744_s11 }
   0x7   :  { %25 = vadd.xlane.f32.xlu0 %v24_v3  ;;  %2487 = vmatpush3.msra.mxu1 %v66_v17  ;;  %v69_v42 = vld [vmem:[%s3187_s2 + $0x48] sm:$0xff]  ;;  %v68_v44 = vld [vmem:[%s3187_s2 + $0x40] sm:$0xff]  ;;  %v2235_v46 = vld [vmem:[%s3187_s2 + $0x98] sm:$0xff] }
   0x8   :  { %2477 = vmatprep.subr.mxu0 %v61_v18  ;;  %2488 = vmatprep.subr.mxu1 %v65_v19  ;;  %v73_v43 = vld [vmem:[%s3187_s2 + $0x68] sm:$0xff]  ;;  %v72_v45 = vld [vmem:[%s3187_s2 + $0x60] sm:$0xff]  ;;  %v2239_v47 = vld [vmem:[%s3187_s2 + $0xb8] sm:$0xff]  ;;  %p2751_p3 = por %p2750_p2, %p2749_p1 }
   0x9   :  { %2478 = vmatpush3.msra.mxu0 %v61_v18  ;;  %2489 = vmatpush3.msra.mxu1 %v65_v19  ;;  %v2234_v48 = vld [vmem:[%s3187_s2 + $0x90] sm:$0xff]  ;;  %v2233_v50 = vld [vmem:[%s3187_s2 + $0x88] sm:$0xff]  ;;  %v2232_v52 = vld [vmem:[%s3187_s2 + $0x80] sm:$0xff] }
   0xa   :  { %2479 = vmatprep.subr.mxu0 %v60_v20  ;;  %2490 = vmatprep.subr.mxu1 %v64_v21  ;;  %v2238_v49 = vld [vmem:[%s3187_s2 + $0xb0] sm:$0xff]  ;;  %v2237_v51 = vld [vmem:[%s3187_s2 + $0xa8] sm:$0xff]  ;;  %v2236_v53 = vld [vmem:[%s3187_s2 + $0xa0] sm:$0xff]  ;;  %p2752_p4 = pnand %p2751_p3, %p2745_p0 }
   0xb   :  { %2480 = vmatpush3.msra.mxu0 %v60_v20  ;;  %2491 = vmatpush3.msra.mxu1 %v64_v21  ;;  %v2243_v54 = vld [vmem:[%s3187_s2 + $0xd8] sm:$0xff]  ;;  %v2242_v56 = vld [vmem:[%s3187_s2 + $0xd0] sm:$0xff]  ;;  %v2241_v58 = vld [vmem:[%s3187_s2 + $0xc8] sm:$0xff] }
   0xc   :  { %2495 = vmatprep.subr.mxu0 %v71_v22  ;;  %2506 = vmatprep.subr.mxu1 %v75_v23  ;;  %v2247_v55 = vld [vmem:[%s3187_s2 + $0xf8] sm:$0xff]  ;;  %v2246_v57 = vld [vmem:[%s3187_s2 + $0xf0] sm:$0xff]  ;;  %v2245_v59 = vld [vmem:[%s3187_s2 + $0xe8] sm:$0xff] }
   0xd   :  { %v2240_v60 = vld [vmem:[%s3187_s2 + $0xc0] sm:$0xff]  ;;  %v2259_v62 = vld [vmem:[%s3187_s2 + $0x118] sm:$0xff]  ;;  %v2257_v2 = vld [vmem:[%s3187_s2 + $0x108] sm:$0xff] }
   0xe   :  { %v2244_v61 = vld [vmem:[%s3187_s2 + $0xe0] sm:$0xff]  ;;  %v2263_v63 = vld [vmem:[%s3187_s2 + $0x138] sm:$0xff]  ;;  %v2261_v3 = vld [vmem:[%s3187_s2 + $0x128] sm:$0xff] }
  0x8c   :  { %v23_v4 = vpop.xlane.xlu0 %22 }
  0x8d   :  { %v28_v5 = vmul.f32 0.03125, %v23_v4  ;;  %v2256_v4 = vld [vmem:[%s3187_s2 + $0x100] sm:$0xff] }
  0x8f   :  { %v30_v6 = vsub.f32 %v18_v0, %v28_v5  ;;  %v2258_v0 = vld [vmem:[%s3187_s2 + $0x110] sm:$0xff]  ;;  %v2260_v5 = vld [vmem:[%s3187_s2 + $0x120] sm:$0xff] }
  0x90   :  { %v26_v7 = vpop.xlane.xlu0 %25 }
  0x91   :  { %v29_v8 = vmul.f32 0.03125, %v26_v7  ;;  %v32_v9 = vmul.f32 %v30_v6, %v30_v6  ;;  %v2271_v7 = vld [vmem:[%s3187_s2 + $0x178] sm:$0xff] }
  0x93   :  { %v31_v10 = vsub.f32 %v19_v1, %v29_v8  ;;  %v34_v11 = vsel %vm20_vm0, %v32_v9, 0.0  ;;  %v2262_v1 = vld [vmem:[%s3187_s2 + $0x130] sm:$0xff] }
  0x94   :  { %35 = vadd.xlane.f32.xlu1 %v34_v11  ;;  %v2266_v8 = vld [vmem:[%s3187_s2 + $0x150] sm:$0xff]  ;;  %v2269_v11 = vld [vmem:[%s3187_s2 + $0x168] sm:$0xff] }
  0x95   :  { %v33_v12 = vmul.f32 %v31_v10, %v31_v10  ;;  %v2270_v9 = vld [vmem:[%s3187_s2 + $0x170] sm:$0xff] }
  0x97   :  { %v37_v13 = vsel %vm20_vm0, %v33_v12, 0.0  ;;  %v2264_v12 = vld [vmem:[%s3187_s2 + $0x140] sm:$0xff] }
  0x98   :  { %38 = vadd.xlane.f32.xlu1 %v37_v13  ;;  %v2268_v13 = vld [vmem:[%s3187_s2 + $0x160] sm:$0xff] }
 0x11d   :  { %v36_v24 = vpop.xlane.xlu1 %35 }
 0x11e   :  { %v40_v25 = vmul.f32 0.03125, %v36_v24 }
 0x120   :  { %v42_v26 = vadd.f32 1e-05, %v40_v25 }
 0x121   :  { %v39_v27 = vpop.xlane.xlu1 %38 }
 0x122   :  { %2708 = vrsqrt.f32 %v42_v26  ;;  %v41_v28 = vmul.f32 0.03125, %v39_v27 }
 0x124   :  { %v43_v29 = vadd.f32 1e-05, %v41_v28 }
 0x126   :  { %2710 = vrsqrt.f32 %v43_v29 }
 0x12f   :  { %v2709_v30 = vpop.eup %2708 }
 0x130   :  { %v46_v32 = vmul.f32 %v2709_v30, %v30_v6  ;;  %v2267_v6 = vld [vmem:[%s3187_s2 + $0x158] sm:$0xff] }
 0x132   :  { %v52_v34 = vmul.f32 %v2222_v31, %v46_v32 }
 0x133   :  { %v2711_v35 = vpop.eup %2710 }
 0x134   :  { %v2835_v36 = vadd.f32 %v2223_v33, %v52_v34  ;;  %v47_v37 = vmul.f32 %v2711_v35, %v31_v10  ;;  %v2265_v10 = vld [vmem:[%s3187_s2 + $0x148] sm:$0xff] }
 0x136   :  { %v53_v38 = vmul.f32 %v2222_v31, %v47_v37  ;;  %2481 = vmatprep.mubr.msk.f32.mxu0 %vm20_vm0, %v2835_v36  ;;  %2492 = vmatprep.mubr.msk.f32.mxu1 %vm20_vm0, %v2835_v36 }
 0x138   :  { %v2841_v39 = vadd.f32 %v2223_v33, %v53_v38 }
 0x13a   :  { %2482 = vmatmul.mubr.msk.f32.vlgmr.msra.gmra.mxu0 %vm20_vm0, %v2841_v39  ;;  %2493 = vmatmul.mubr.msk.f32.vlgmr.msra.gmra.mxu1 %vm20_vm0, %v2841_v39 }
 0x13b   :  { %2496 = vmatpush3.msra.mxu0 %v71_v22  ;;  %2507 = vmatpush3.msra.mxu1 %v75_v23 }
 0x13c   :  { %2497 = vmatprep.subr.mxu0 %v70_v40  ;;  %2503 = vmatprep.mubr.msk.f32.mxu0 %vm20_vm0, %v2835_v36 }
 0x13d   :  { %2508 = vmatprep.subr.mxu1 %v74_v41  ;;  %2514 = vmatprep.mubr.msk.f32.mxu1 %vm20_vm0, %v2835_v36 }
 0x13e   :  { %2498 = vmatpush3.msra.mxu0 %v70_v40  ;;  %2509 = vmatpush3.msra.mxu1 %v74_v41 }
 0x13f   :  { %2499 = vmatprep.subr.mxu0 %v69_v42  ;;  %2510 = vmatprep.subr.mxu1 %v73_v43 }
 0x140   :  { %2500 = vmatpush3.msra.mxu0 %v69_v42  ;;  %2511 = vmatpush3.msra.mxu1 %v73_v43 }
 0x141   :  { %2501 = vmatprep.subr.mxu0 %v68_v44  ;;  %2512 = vmatprep.subr.mxu1 %v72_v45 }
 0x142   :  { %2502 = vmatpush3.msra.mxu0 %v68_v44  ;;  %2513 = vmatpush3.msra.mxu1 %v72_v45 }
 0x143   :  { %2504 = vmatmul.mubr.msk.f32.vlgmr.msra.gmra.mxu0 %vm20_vm0, %v2841_v39  ;;  %2515 = vmatmul.mubr.msk.f32.vlgmr.msra.gmra.mxu1 %vm20_vm0, %v2841_v39 }
 0x144   :  { %2517 = vmatprep.subr.mxu0 %v2235_v46  ;;  %2528 = vmatprep.subr.mxu1 %v2239_v47 }
 0x145   :  { %2518 = vmatpush3.msra.mxu0 %v2235_v46  ;;  %2525 = vmatprep.mubr.msk.f32.mxu0 %vm20_vm0, %v2835_v36 }
 0x146   :  { %2529 = vmatpush3.msra.mxu1 %v2239_v47  ;;  %2536 = vmatprep.mubr.msk.f32.mxu1 %vm20_vm0, %v2835_v36 }
 0x147   :  { %2519 = vmatprep.subr.mxu0 %v2234_v48  ;;  %2530 = vmatprep.subr.mxu1 %v2238_v49 }
 0x148   :  { %2520 = vmatpush3.msra.mxu0 %v2234_v48  ;;  %2531 = vmatpush3.msra.mxu1 %v2238_v49 }
 0x149   :  { %2521 = vmatprep.subr.mxu0 %v2233_v50  ;;  %2532 = vmatprep.subr.mxu1 %v2237_v51 }
 0x14a   :  { %2522 = vmatpush3.msra.mxu0 %v2233_v50  ;;  %2533 = vmatpush3.msra.mxu1 %v2237_v51 }
 0x14b   :  { %2523 = vmatprep.subr.mxu0 %v2232_v52  ;;  %2534 = vmatprep.subr.mxu1 %v2236_v53 }
 0x14c   :  { %2524 = vmatpush3.msra.mxu0 %v2232_v52  ;;  %2535 = vmatpush3.msra.mxu1 %v2236_v53 }
 0x14d   :  { %2526 = vmatmul.mubr.msk.f32.vlgmr.msra.gmra.mxu0 %vm20_vm0, %v2841_v39  ;;  %2537 = vmatmul.mubr.msk.f32.vlgmr.msra.gmra.mxu1 %vm20_vm0, %v2841_v39 }
 0x14e   :  { %2539 = vmatprep.subr.mxu0 %v2243_v54  ;;  %2550 = vmatprep.subr.mxu1 %v2247_v55 }
 0x14f   :  { %2540 = vmatpush3.msra.mxu0 %v2243_v54  ;;  %2547 = vmatprep.mubr.msk.f32.mxu0 %vm20_vm0, %v2835_v36 }
 0x150   :  { %2551 = vmatpush3.msra.mxu1 %v2247_v55  ;;  %2558 = vmatprep.mubr.msk.f32.mxu1 %vm20_vm0, %v2835_v36 }
 0x151   :  { %2541 = vmatprep.subr.mxu0 %v2242_v56  ;;  %2552 = vmatprep.subr.mxu1 %v2246_v57 }
 0x152   :  { %2542 = vmatpush3.msra.mxu0 %v2242_v56  ;;  %2553 = vmatpush3.msra.mxu1 %v2246_v57 }
 0x153   :  { %2543 = vmatprep.subr.mxu0 %v2241_v58  ;;  %2554 = vmatprep.subr.mxu1 %v2245_v59 }
 0x154   :  { %2544 = vmatpush3.msra.mxu0 %v2241_v58  ;;  %2555 = vmatpush3.msra.mxu1 %v2245_v59 }
 0x155   :  { %2545 = vmatprep.subr.mxu0 %v2240_v60  ;;  %2556 = vmatprep.subr.mxu1 %v2244_v61 }
 0x156   :  { %2546 = vmatpush3.msra.mxu0 %v2240_v60  ;;  %2557 = vmatpush3.msra.mxu1 %v2244_v61 }
 0x157   :  { %2548 = vmatmul.mubr.msk.f32.vlgmr.msra.gmra.mxu0 %vm20_vm0, %v2841_v39  ;;  %2559 = vmatmul.mubr.msk.f32.vlgmr.msra.gmra.mxu1 %vm20_vm0, %v2841_v39 }
 0x158   :  { %2561 = vmatprep.subr.mxu0 %v2259_v62  ;;  %2572 = vmatprep.subr.mxu1 %v2263_v63 }
 0x159   :  { %2562 = vmatpush3.msra.mxu0 %v2259_v62  ;;  %2569 = vmatprep.mubr.msk.f32.mxu0 %vm20_vm0, %v2835_v36 }
 0x15a   :  { %2573 = vmatpush3.msra.mxu1 %v2263_v63  ;;  %2580 = vmatprep.mubr.msk.f32.mxu1 %vm20_vm0, %v2835_v36 }
 0x15b   :  { %2563 = vmatprep.subr.mxu0 %v2258_v0  ;;  %2574 = vmatprep.subr.mxu1 %v2262_v1 }
 0x15c   :  { %2564 = vmatpush3.msra.mxu0 %v2258_v0  ;;  %2575 = vmatpush3.msra.mxu1 %v2262_v1 }
 0x15d   :  { %2565 = vmatprep.subr.mxu0 %v2257_v2  ;;  %2576 = vmatprep.subr.mxu1 %v2261_v3 }
 0x15e   :  { %2566 = vmatpush3.msra.mxu0 %v2257_v2  ;;  %2577 = vmatpush3.msra.mxu1 %v2261_v3 }
 0x15f   :  { %2567 = vmatprep.subr.mxu0 %v2256_v4  ;;  %2578 = vmatprep.subr.mxu1 %v2260_v5 }
 0x160   :  { %2568 = vmatpush3.msra.mxu0 %v2256_v4  ;;  %2579 = vmatpush3.msra.mxu1 %v2260_v5 }
 0x161   :  { %2570 = vmatmul.mubr.msk.f32.vlgmr.msra.gmra.mxu0 %vm20_vm0, %v2841_v39  ;;  %2581 = vmatmul.mubr.msk.f32.vlgmr.msra.gmra.mxu1 %vm20_vm0, %v2841_v39 }
 0x162   :  { %2583 = vmatprep.subr.mxu0 %v2267_v6  ;;  %2594 = vmatprep.subr.mxu1 %v2271_v7 }
 0x163   :  { %2584 = vmatpush3.msra.mxu0 %v2267_v6  ;;  %2591 = vmatprep.mubr.msk.f32.mxu0 %vm20_vm0, %v2835_v36 }
 0x164   :  { %2595 = vmatpush3.msra.mxu1 %v2271_v7  ;;  %2602 = vmatprep.mubr.msk.f32.mxu1 %vm20_vm0, %v2835_v36  ;;  %v1373_v36 = vlaneseq }
 0x165   :  { %2585 = vmatprep.subr.mxu0 %v2266_v8  ;;  %2596 = vmatprep.subr.mxu1 %v2270_v9 }
 0x166   :  { %2586 = vmatpush3.msra.mxu0 %v2266_v8  ;;  %2597 = vmatpush3.msra.mxu1 %v2270_v9  ;;  %v1374_v37 = vshrl.u32 %v1373_v36, 7 }
 0x167   :  { %2587 = vmatprep.subr.mxu0 %v2265_v10  ;;  %2598 = vmatprep.subr.mxu1 %v2269_v11 }
 0x168   :  { %2588 = vmatpush3.msra.mxu0 %v2265_v10  ;;  %2599 = vmatpush3.msra.mxu1 %v2269_v11  ;;  %v1375_v38 = vadd.s32 8, %v1374_v37  ;;  %v1378_v44 = vshra.s32 %v1374_v37, 3 }
 0x169   :  { %2589 = vmatprep.subr.mxu0 %v2264_v12  ;;  %2600 = vmatprep.subr.mxu1 %v2268_v13 }
 0x16a   :  { %2590 = vmatpush3.msra.mxu0 %v2264_v12  ;;  %2601 = vmatpush3.msra.mxu1 %v2268_v13  ;;  %v1379_v40 = vshra.s32 %v1375_v38, 3 }
 0x16b   :  { %2592 = vmatmul.mubr.msk.f32.vlgmr.msra.gmra.mxu0 %vm20_vm0, %v2841_v39  ;;  %2603 = vmatmul.mubr.msk.f32.vlgmr.msra.gmra.mxu1 %vm20_vm0, %v2841_v39  ;;  %v1377_v39 = vand.u32 127, %v1373_v36 }
 0x16d   :  { %v1380_v41 = vshra.s32 %v1377_v39, 3 }
 0x16f   :  { %vm3035_vm2 = vcmp.eq.s32.totalorder %v1379_v40, %v1380_v41  ;;  %vm3039_vm3 = vcmp.eq.s32.totalorder %v1378_v44, %v1380_v41 }
 0x1fa   :  { %v2483_v14 = vpop.f32.mrf.mxu0  ;;  %v2494_v15 = vpop.f32.mrf.mxu1 }
 0x1fc   :  { %v148_v16 = vpop.f32.mrf.mxu0  ;;  %v223_v17 = vpop.f32.mrf.mxu1 }
 0x1fd   :  { %2609 = vmatprep.mubr.msk.f32.mxu0 %vm1016_vm1, %v148_v16  ;;  %2616 = vmatprep.mubr.msk.f32.mxu1 %vm1016_vm1, %v223_v17 }
 0x203   :  { %v2505_v18 = vpop.f32.mrf.mxu0  ;;  %v2516_v19 = vpop.f32.mrf.mxu1 }
 0x205   :  { %v298_v20 = vpop.f32.mrf.mxu0  ;;  %v373_v21 = vpop.f32.mrf.mxu1 }
 0x20d   :  { %v2527_v22 = vpop.f32.mrf.mxu0  ;;  %v2538_v23 = vpop.f32.mrf.mxu1 }
 0x20e   :  { %2605 = vmatprep.subr.msk.mxu0 %vm1016_vm1, %v2527_v22  ;;  %2612 = vmatprep.subr.msk.mxu1 %vm1016_vm1, %v2538_v23 }
 0x20f   :  { %v465_v24 = vpop.f32.mrf.mxu0  ;;  %v540_v25 = vpop.f32.mrf.mxu1  ;;  %2606 = vmatpush3.xpose.msk.msra.mxu0 %vm1016_vm1, %v2527_v22  ;;  %2613 = vmatpush3.xpose.msk.msra.mxu1 %vm1016_vm1, %v2538_v23 }
 0x210   :  { %2607 = vmatprep.subr.msk.mxu0 %vm1016_vm1, %v465_v24  ;;  %2614 = vmatprep.subr.msk.mxu1 %vm1016_vm1, %v540_v25 }
 0x213   :  { %2608 = vmatpush3.xpose.msk.msra.mxu0 %vm1016_vm1, %v465_v24  ;;  %2615 = vmatpush3.xpose.msk.msra.mxu1 %vm1016_vm1, %v540_v25 }
 0x216   :  { %2610 = vmatmul.mubr.msk.f32.vlgmr.msra.gmra.mxu0 %vm1016_vm1, %v2483_v14  ;;  %2617 = vmatmul.mubr.msk.f32.vlgmr.msra.gmra.mxu1 %vm1016_vm1, %v2494_v15 }
 0x217   :  { %v2549_v26 = vpop.f32.mrf.mxu0  ;;  %v2560_v27 = vpop.f32.mrf.mxu1  ;;  %2623 = vmatprep.mubr.msk.f32.mxu0 %vm1016_vm1, %v298_v20  ;;  %2630 = vmatprep.mubr.msk.f32.mxu1 %vm1016_vm1, %v373_v21 }
 0x218   :  { %2619 = vmatprep.subr.msk.mxu0 %vm1016_vm1, %v2549_v26  ;;  %2626 = vmatprep.subr.msk.mxu1 %vm1016_vm1, %v2560_v27 }
 0x219   :  { %v615_v28 = vpop.f32.mrf.mxu0  ;;  %v690_v29 = vpop.f32.mrf.mxu1  ;;  %2620 = vmatpush3.xpose.msk.msra.mxu0 %vm1016_vm1, %v2549_v26  ;;  %2627 = vmatpush3.xpose.msk.msra.mxu1 %vm1016_vm1, %v2560_v27 }
 0x21a   :  { %2621 = vmatprep.subr.msk.mxu0 %vm1016_vm1, %v615_v28  ;;  %2628 = vmatprep.subr.msk.mxu1 %vm1016_vm1, %v690_v29 }
 0x21d   :  { %2622 = vmatpush3.xpose.msk.msra.mxu0 %vm1016_vm1, %v615_v28  ;;  %2629 = vmatpush3.xpose.msk.msra.mxu1 %vm1016_vm1, %v690_v29 }
 0x220   :  { %2624 = vmatmul.mubr.msk.f32.vlgmr.msra.gmra.mxu0 %vm1016_vm1, %v2505_v18  ;;  %2631 = vmatmul.mubr.msk.f32.vlgmr.msra.gmra.mxu1 %vm1016_vm1, %v2516_v19 }
 0x221   :  { %v2571_v30 = vpop.f32.mrf.mxu0  ;;  %v2582_v31 = vpop.f32.mrf.mxu1 }
 0x222   :  { %2633 = vmatprep.subr.mxu0 %v2571_v30  ;;  %2640 = vmatprep.subr.mxu1 %v2582_v31 }
 0x223   :  { %v782_v32 = vpop.f32.mrf.mxu0  ;;  %v857_v33 = vpop.f32.mrf.mxu1  ;;  %2634 = vmatpush3.msra.mxu0 %v2571_v30  ;;  %2641 = vmatpush3.msra.mxu1 %v2582_v31 }
 0x224   :  { %2635 = vmatprep.subr.mxu0 %v782_v32  ;;  %2642 = vmatprep.subr.mxu1 %v857_v33 }
 0x225   :  { %2636 = vmatpush3.msra.mxu0 %v782_v32  ;;  %2643 = vmatpush3.msra.mxu1 %v857_v33 }
 0x22b   :  { %v3025_v34 = vpop.f32.mrf.mxu0  ;;  %v3027_v35 = vpop.f32.mrf.mxu1 }
 0x22c   :  { %2647 = vmatprep.subr.mxu0 %v3025_v34  ;;  %2654 = vmatprep.subr.mxu1 %v3027_v35 }
 0x22d   :  { %v3031_v42 = vpop.f32.mrf.mxu0  ;;  %v3033_v43 = vpop.f32.mrf.mxu1 }
 0x2d6   :  { %v2611_v45 = vpop.f32.mrf.mxu0  ;;  %v2618_v46 = vpop.f32.mrf.mxu1 }
 0x2d7   :  { %v1366_v48 = vmul.f32 0.25, %v2611_v45  ;;  %v1368_v49 = vmul.f32 0.25, %v2618_v46 }
 0x2d8   :  { %v1095_v50 = vpop.f32.mrf.mxu0  ;;  %v1182_v51 = vpop.f32.mrf.mxu1 }
 0x2d9   :  { %v1365_v53 = vmul.f32 0.25, %v1095_v50  ;;  %v1367_v54 = vmul.f32 0.25, %v1182_v51  ;;  %v1384_v55 = vsel %vm3035_vm2, %v1366_v48, -1e+30  ;;  %v1386_v58 = vsel %vm3035_vm2, %v1368_v49, -1e+30 }
 0x2da   :  { %v1394_v56 = vsel %vm1016_vm1, %v1384_v55, -inf  ;;  %v1400_v61 = vsel %vm1016_vm1, %v1386_v58, -inf }
 0x2db   :  { %1395 = vmax.xlane.f32.xlu1 %v1394_v56  ;;  %v1383_v57 = vsel %vm3039_vm3, %v1365_v53, -1e+30  ;;  %v1385_v60 = vsel %vm3039_vm3, %v1367_v54, -1e+30 }
 0x2dc   :  { %v1391_v59 = vsel %vm1016_vm1, %v1383_v57, -inf  ;;  %v1397_v0 = vsel %vm1016_vm1, %v1385_v60, -inf }
 0x2dd   :  { %1392 = vmax.xlane.f32.xlu0 %v1391_v59 }
 0x2df   :  { %1401 = vmax.xlane.f32.xlu1 %v1400_v61 }
 0x2e0   :  { %v2625_v62 = vpop.f32.mrf.mxu0  ;;  %v2632_v63 = vpop.f32.mrf.mxu1 }
 0x2e1   :  { %v1370_v1 = vmul.f32 0.25, %v2625_v62  ;;  %v1372_v2 = vmul.f32 0.25, %v2632_v63  ;;  %1398 = vmax.xlane.f32.xlu0 %v1397_v0 }
 0x2e2   :  { %v1269_v3 = vpop.f32.mrf.mxu0  ;;  %v1356_v4 = vpop.f32.mrf.mxu1 }
 0x2e3   :  { %v1369_v5 = vmul.f32 0.25, %v1269_v3  ;;  %v1371_v6 = vmul.f32 0.25, %v1356_v4  ;;  %v1388_v7 = vsel %vm3035_vm2, %v1370_v1, -1e+30  ;;  %v1390_v10 = vsel %vm3035_vm2, %v1372_v2, -1e+30 }
 0x2e4   :  { %v1406_v8 = vsel %vm1016_vm1, %v1388_v7, -inf  ;;  %v1412_v13 = vsel %vm1016_vm1, %v1390_v10, -inf }
 0x2e5   :  { %1407 = vmax.xlane.f32.xlu1 %v1406_v8  ;;  %v1387_v9 = vsel %vm3039_vm3, %v1369_v5, -1e+30  ;;  %v1389_v12 = vsel %vm3039_vm3, %v1371_v6, -1e+30 }
 0x2e6   :  { %v1403_v11 = vsel %vm1016_vm1, %v1387_v9, -inf  ;;  %v1409_v14 = vsel %vm1016_vm1, %v1389_v12, -inf }
 0x2e7   :  { %1404 = vmax.xlane.f32.xlu0 %v1403_v11 }
 0x2e9   :  { %1413 = vmax.xlane.f32.xlu1 %v1412_v13 }
 0x2eb   :  { %1410 = vmax.xlane.f32.xlu0 %v1409_v14 }
 0x364   :  { %v1396_v15 = vpop.xlane.xlu1 %1395 }
 0x365   :  { %v1416_v16 = vsub.f32 %v1384_v55, %v1396_v15 }
 0x366   :  { %v1393_v17 = vpop.xlane.xlu0 %1392 }
 0x367   :  { %v1425_v18 = vmul.f32 1.442695, %v1416_v16  ;;  %v1415_v19 = vsub.f32 %v1383_v57, %v1393_v17 }
 0x368   :  { %v1402_v20 = vpop.xlane.xlu1 %1401 }
 0x369   :  { %2712 = vpow2.f32 %v1425_v18  ;;  %v1423_v21 = vmul.f32 1.442695, %v1415_v19  ;;  %v1418_v22 = vsub.f32 %v1386_v58, %v1402_v20  ;;  %v2310_v19 = vld [vmem:[%s3187_s2 + $0x1b0] sm:$0xff]  ;;  %v2304_v20 = vld [vmem:[%s3187_s2 + $0x180] sm:$0xff] }
 0x36a   :  { %v1399_v23 = vpop.xlane.xlu0 %1398 }
 0x36b   :  { %2714 = vpow2.f32 %v1423_v21  ;;  %v1429_v24 = vmul.f32 1.442695, %v1418_v22  ;;  %v1417_v25 = vsub.f32 %v1385_v60, %v1399_v23  ;;  %v2309_v21 = vld [vmem:[%s3187_s2 + $0x1a8] sm:$0xff]  ;;  %v2308_v22 = vld [vmem:[%s3187_s2 + $0x1a0] sm:$0xff]  ;;  %v2315_v23 = vld [vmem:[%s3187_s2 + $0x1d8] sm:$0xff] }
 0x36d   :  { %2716 = vpow2.f32 %v1429_v24  ;;  %v1427_v26 = vmul.f32 1.442695, %v1417_v25  ;;  %v2319_v24 = vld [vmem:[%s3187_s2 + $0x1f8] sm:$0xff] }
 0x36e   :  { %v1408_v27 = vpop.xlane.xlu1 %1407 }
 0x36f   :  { %2718 = vpow2.f32 %v1427_v26  ;;  %v1420_v28 = vsub.f32 %v1388_v7, %v1408_v27  ;;  %v2314_v27 = vld [vmem:[%s3187_s2 + $0x1d0] sm:$0xff] }
 0x370   :  { %v1405_v29 = vpop.xlane.xlu0 %1404 }
 0x371   :  { %v1433_v30 = vmul.f32 1.442695, %v1420_v28  ;;  %v1419_v31 = vsub.f32 %v1387_v9, %v1405_v29 }
 0x372   :  { %v1414_v32 = vpop.xlane.xlu1 %1413 }
 0x373   :  { %2720 = vpow2.f32 %v1433_v30  ;;  %v1431_v33 = vmul.f32 1.442695, %v1419_v31  ;;  %v1422_v36 = vsub.f32 %v1390_v10, %v1414_v32  ;;  %v2307_v10 = vld [vmem:[%s3187_s2 + $0x198] sm:$0xff]  ;;  %v2313_v30 = vld [vmem:[%s3187_s2 + $0x1c8] sm:$0xff]  ;;  %v2318_v31 = vld [vmem:[%s3187_s2 + $0x1f0] sm:$0xff] }
 0x374   :  { %v1411_v37 = vpop.xlane.xlu0 %1410 }
 0x375   :  { %2722 = vpow2.f32 %v1431_v33  ;;  %v1437_v38 = vmul.f32 1.442695, %v1422_v36  ;;  %v1421_v39 = vsub.f32 %v1389_v12, %v1411_v37  ;;  %v2312_v33 = vld [vmem:[%s3187_s2 + $0x1c0] sm:$0xff]  ;;  %v2317_v37 = vld [vmem:[%s3187_s2 + $0x1e8] sm:$0xff] }
 0x376   :  { %v2713_v40 = vpop.eup %2712 }
 0x377   :  { %2724 = vpow2.f32 %v1437_v38  ;;  %v1435_v41 = vmul.f32 1.442695, %v1421_v39  ;;  %v1442_v44 = vsel %vm1016_vm1, %v2713_v40, 0.0 }
 0x378   :  { %v2715_v45 = vpop.eup %2714  ;;  %1443 = vadd.xlane.f32.xlu1 %v1442_v44 }
 0x379   :  { %2726 = vpow2.f32 %v1435_v41  ;;  %v1439_v46 = vsel %vm1016_vm1, %v2715_v45, 0.0 }
 0x37a   :  { %v2717_v47 = vpop.eup %2716  ;;  %1440 = vadd.xlane.f32.xlu0 %v1439_v46 }
 0x37b   :  { %v1448_v48 = vsel %vm1016_vm1, %v2717_v47, 0.0 }
 0x37c   :  { %v2719_v49 = vpop.eup %2718  ;;  %1449 = vadd.xlane.f32.xlu1 %v1448_v48 }
 0x37d   :  { %v1445_v50 = vsel %vm1016_vm1, %v2719_v49, 0.0 }
 0x37e   :  { %1446 = vadd.xlane.f32.xlu0 %v1445_v50 }
 0x380   :  { %v2721_v51 = vpop.eup %2720 }
 0x381   :  { %v1454_v52 = vsel %vm1016_vm1, %v2721_v51, 0.0 }
 0x382   :  { %v2723_v53 = vpop.eup %2722  ;;  %1455 = vadd.xlane.f32.xlu1 %v1454_v52  ;;  %v2344_v52 = vld [vmem:[%s3186_s1 + $0x2] ss:$0 sm:$0xff] }
 0x383   :  { %v1451_v54 = vsel %vm1016_vm1, %v2723_v53, 0.0 }
 0x384   :  { %v2725_v55 = vpop.eup %2724  ;;  %1452 = vadd.xlane.f32.xlu0 %v1451_v54 }
 0x385   :  { %v1460_v56 = vsel %vm1016_vm1, %v2725_v55, 0.0 }
 0x386   :  { %v2727_v57 = vpop.eup %2726  ;;  %1461 = vadd.xlane.f32.xlu1 %v1460_v56 }
 0x387   :  { %v1457_v58 = vsel %vm1016_vm1, %v2727_v57, 0.0 }
 0x388   :  { %1458 = vadd.xlane.f32.xlu0 %v1457_v58 }
 0x401   :  { %v1444_v59 = vpop.xlane.xlu1 %1443 }
 0x402   :  { %2728 = vrcp.f32 %v1444_v59 }
 0x403   :  { %v1441_v60 = vpop.xlane.xlu0 %1440 }
 0x404   :  { %2730 = vrcp.f32 %v1441_v60 }
 0x405   :  { %v1450_v61 = vpop.xlane.xlu1 %1449 }
 0x406   :  { %2732 = vrcp.f32 %v1450_v61 }
 0x407   :  { %v1447_v62 = vpop.xlane.xlu0 %1446 }
 0x408   :  { %2734 = vrcp.f32 %v1447_v62 }
 0x40b   :  { %v1456_v63 = vpop.xlane.xlu1 %1455 }
 0x40c   :  { %2736 = vrcp.f32 %v1456_v63 }
 0x40d   :  { %v1453_v0 = vpop.xlane.xlu0 %1452 }
 0x40e   :  { %2738 = vrcp.f32 %v1453_v0 }
 0x40f   :  { %v1462_v1 = vpop.xlane.xlu1 %1461  ;;  %v2729_v2 = vpop.eup %2728 }
 0x410   :  { %2740 = vrcp.f32 %v1462_v1  ;;  %v1472_v6 = vmul.f32 %v2729_v2, %v2713_v40  ;;  %v2316_v40 = vld [vmem:[%s3187_s2 + $0x1e0] sm:$0xff] }
 0x411   :  { %v2731_v3 = vpop.eup %2730  ;;  %v1459_v4 = vpop.xlane.xlu0 %1458 }
 0x412   :  { %2742 = vrcp.f32 %v1459_v4  ;;  %v1471_v5 = vmul.f32 %v2731_v3, %v2715_v45 }
 0x413   :  { %v2733_v7 = vpop.eup %2732 }
 0x414   :  { %2637 = vmatprep.mubr.msk.f32.mxu0 %vm1016_vm1, %v1471_v5  ;;  %v1474_v11 = vmul.f32 %v2733_v7, %v2717_v47 }
 0x415   :  { %v2735_v8 = vpop.eup %2734  ;;  %2638 = vmatmul.mubr.msk.f32.vlgmr.msra.gmra.mxu0 %vm1016_vm1, %v1472_v6 }
 0x416   :  { %2648 = vmatpush3.msra.mxu0 %v3025_v34  ;;  %v1473_v9 = vmul.f32 %v2735_v8, %v2719_v49  ;;  %v2311_v34 = vld [vmem:[%s3187_s2 + $0x1b8] sm:$0xff] }
 0x417   :  { %2649 = vmatprep.subr.mxu0 %v3031_v42 }
 0x418   :  { %2650 = vmatpush3.msra.mxu0 %v3031_v42  ;;  %2644 = vmatprep.mubr.msk.f32.mxu1 %vm1016_vm1, %v1473_v9 }
 0x419   :  { %2645 = vmatmul.mubr.msk.f32.vlgmr.msra.gmra.mxu1 %vm1016_vm1, %v1474_v11  ;;  %2661 = vmatprep.subr.msk.mxu0 %vm1016_vm1, %v2307_v10  ;;  %v2737_v12 = vpop.eup %2736 }
 0x41a   :  { %2655 = vmatpush3.msra.mxu1 %v3027_v35  ;;  %v1476_v42 = vmul.f32 %v2737_v12, %v2721_v51  ;;  %v2306_v35 = vld [vmem:[%s3187_s2 + $0x190] sm:$0xff] }
 0x41b   :  { %v2739_v13 = vpop.eup %2738  ;;  %2656 = vmatprep.subr.mxu1 %v3033_v43 }
 0x41c   :  { %2657 = vmatpush3.msra.mxu1 %v3033_v43  ;;  %v1475_v14 = vmul.f32 %v2739_v13, %v2723_v53  ;;  %v2305_v43 = vld [vmem:[%s3187_s2 + $0x188] sm:$0xff] }
 0x41d   :  { %2672 = vmatprep.subr.msk.mxu1 %vm1016_vm1, %v2311_v34  ;;  %v2741_v15 = vpop.eup %2740 }
 0x41e   :  { %2651 = vmatprep.mubr.msk.f32.mxu0 %vm1016_vm1, %v1475_v14  ;;  %v1478_v18 = vmul.f32 %v2741_v15, %v2725_v55 }
 0x41f   :  { %v2743_v16 = vpop.eup %2742  ;;  %2652 = vmatmul.mubr.msk.f32.vlgmr.msra.gmra.mxu0 %vm1016_vm1, %v1476_v42 }
 0x420   :  { %v1477_v17 = vmul.f32 %v2743_v16, %v2727_v57  ;;  %2662 = vmatpush3.xpose.msk.msra.mxu0 %vm1016_vm1, %v2307_v10 }
 0x421   :  { %2663 = vmatprep.subr.msk.mxu0 %vm1016_vm1, %v2306_v35 }
 0x422   :  { %2658 = vmatprep.mubr.msk.f32.mxu1 %vm1016_vm1, %v1477_v17 }
 0x423   :  { %2659 = vmatmul.mubr.msk.f32.vlgmr.msra.gmra.mxu1 %vm1016_vm1, %v1478_v18 }
 0x424   :  { %2664 = vmatpush3.xpose.msk.msra.mxu0 %vm1016_vm1, %v2306_v35  ;;  %2673 = vmatpush3.xpose.msk.msra.mxu1 %vm1016_vm1, %v2311_v34 }
 0x425   :  { %2665 = vmatprep.subr.msk.mxu0 %vm1016_vm1, %v2305_v43  ;;  %2674 = vmatprep.subr.msk.mxu1 %vm1016_vm1, %v2310_v19 }
 0x428   :  { %2666 = vmatpush3.xpose.msk.msra.mxu0 %vm1016_vm1, %v2305_v43  ;;  %2675 = vmatpush3.xpose.msk.msra.mxu1 %vm1016_vm1, %v2310_v19 }
 0x429   :  { %2667 = vmatprep.subr.msk.mxu0 %vm1016_vm1, %v2304_v20  ;;  %2676 = vmatprep.subr.msk.mxu1 %vm1016_vm1, %v2309_v21 }
 0x42c   :  { %2668 = vmatpush3.xpose.msk.msra.mxu0 %vm1016_vm1, %v2304_v20  ;;  %2677 = vmatpush3.xpose.msk.msra.mxu1 %vm1016_vm1, %v2309_v21 }
 0x42d   :  { %2678 = vmatprep.subr.msk.mxu1 %vm1016_vm1, %v2308_v22  ;;  %2683 = vmatprep.subr.msk.mxu0 %vm1016_vm1, %v2315_v23 }
 0x430   :  { %2679 = vmatpush3.xpose.msk.msra.mxu1 %vm1016_vm1, %v2308_v22 }
 0x431   :  { %2694 = vmatprep.subr.msk.mxu1 %vm1016_vm1, %v2319_v24 }
 0x4d5   :  { %v2639_v25 = vpop.f32.mrf.mxu0 }
 0x4d7   :  { %v1551_v26 = vpop.f32.mrf.mxu0 }
 0x4d8   :  { %2669 = vmatprep.mubr.msk.f32.mxu0 %vm1016_vm1, %v1551_v26 }
 0x4d9   :  { %v2646_v28 = vpop.f32.mrf.mxu1  ;;  %2670 = vmatmul.mubr.msk.f32.vlgmr.msra.gmra.mxu0 %vm1016_vm1, %v2639_v25 }
 0x4da   :  { %2684 = vmatpush3.xpose.msk.msra.mxu0 %vm1016_vm1, %v2315_v23 }
 0x4db   :  { %v1632_v29 = vpop.f32.mrf.mxu1  ;;  %2685 = vmatprep.subr.msk.mxu0 %vm1016_vm1, %v2314_v27 }
 0x4dc   :  { %2680 = vmatprep.mubr.msk.f32.mxu1 %vm1016_vm1, %v1632_v29 }
 0x4dd   :  { %2681 = vmatmul.mubr.msk.f32.vlgmr.msra.gmra.mxu1 %vm1016_vm1, %v2646_v28 }
 0x4de   :  { %2686 = vmatpush3.xpose.msk.msra.mxu0 %vm1016_vm1, %v2314_v27  ;;  %2695 = vmatpush3.xpose.msk.msra.mxu1 %vm1016_vm1, %v2319_v24 }
 0x4df   :  { %v2653_v32 = vpop.f32.mrf.mxu0  ;;  %2687 = vmatprep.subr.msk.mxu0 %vm1016_vm1, %v2313_v30  ;;  %2696 = vmatprep.subr.msk.mxu1 %vm1016_vm1, %v2318_v31 }
 0x4e1   :  { %v1713_v36 = vpop.f32.mrf.mxu0 }
 0x4e2   :  { %2691 = vmatprep.mubr.msk.f32.mxu0 %vm1016_vm1, %v1713_v36  ;;  %2688 = vmatpush3.xpose.msk.msra.mxu0 %vm1016_vm1, %v2313_v30 }
 0x4e3   :  { %v2660_v38 = vpop.f32.mrf.mxu1  ;;  %2697 = vmatpush3.xpose.msk.msra.mxu1 %vm1016_vm1, %v2318_v31  ;;  %2689 = vmatprep.subr.msk.mxu0 %vm1016_vm1, %v2312_v33 }
 0x4e4   :  { %2698 = vmatprep.subr.msk.mxu1 %vm1016_vm1, %v2317_v37 }
 0x4e5   :  { %v1794_v39 = vpop.f32.mrf.mxu1 }
 0x4e6   :  { %2702 = vmatprep.mubr.msk.f32.mxu1 %vm1016_vm1, %v1794_v39  ;;  %2690 = vmatpush3.xpose.msk.msra.mxu0 %vm1016_vm1, %v2312_v33 }
 0x4e7   :  { %2699 = vmatpush3.xpose.msk.msra.mxu1 %vm1016_vm1, %v2317_v37 }
 0x4e8   :  { %2700 = vmatprep.subr.msk.mxu1 %vm1016_vm1, %v2316_v40 }
 0x4e9   :  { %2692 = vmatmul.mubr.msk.f32.vlgmr.msra.gmra.mxu0 %vm1016_vm1, %v2653_v32 }
 0x4eb   :  { %2701 = vmatpush3.xpose.msk.msra.mxu1 %vm1016_vm1, %v2316_v40 }
 0x4ee   :  { %2703 = vmatmul.mubr.msk.f32.vlgmr.msra.gmra.mxu1 %vm1016_vm1, %v2660_v38 }
 0x599   :  { %v2671_v41 = vpop.f32.mrf.mxu0 }
 0x59b   :  { %v1904_v45 = vpop.f32.mrf.mxu0 }
 0x59d   :  { %v2682_v44 = vpop.f32.mrf.mxu1 }
 0x59e   :  { %v2193_v48 = vadd.f32 %v2682_v44, %v2671_v41 }
 0x59f   :  { %v1997_v47 = vpop.f32.mrf.mxu1 }
 0x5a0   :  { %v2192_v50 = vadd.f32 %v1997_v47, %v1904_v45 }
 0x5a9   :  { %v2693_v46 = vpop.f32.mrf.mxu0 }
 0x5aa   :  { %v2195_v51 = vadd.f32 %v2693_v46, %v2193_v48 }
 0x5ab   :  { %v2090_v49 = vpop.f32.mrf.mxu0 }
 0x5ac   :  { %v2194_v54 = vadd.f32 %v2192_v50, %v2090_v49 }
 0x5ae   :  { %v2704_v53 = vpop.f32.mrf.mxu1 }
 0x5af   :  { %v2197_v55 = vadd.f32 %v2704_v53, %v2195_v51 }
 0x5b0   :  { %v2183_v56 = vpop.f32.mrf.mxu1 }
 0x5b1   :  { %v2203_v57 = vadd.f32 %v2344_v52, %v2197_v55  ;;  %v2196_v58 = vadd.f32 %v2194_v54, %v2183_v56 }
 0x5b3   :  { %2205 = vst.msk [vmem:[#allocation2 + $0x8] sm:$0xff] %vm20_vm0, %v2203_v57  ;;  %v2202_v59 = vadd.f32 %v2344_v52, %v2196_v58 }
 0x5b5   :  { %2204 = vst.msk [vmem:[#allocation2] sm:$0xff] %vm20_vm0, %v2202_v59 }
 0x5b6   :  { %2755 = shalt.err (!%p2752_p4)
}
 0x5b7   :  { %s2767_s1 = smov 128   ;;  %s2768_s12 = smov 8  }
 0x5b8   :  { %2217 = dma.vmem_to_hbm [thread:$0]  %s2212_s10, 256, %s3188_s3, [#allocation3], %s2767_s1, %s2767_s1, %s2768_s12  }
 0x5b9   :  { %2764 = dma.done.wait [#allocation3], 256  }
 0x5ba   :  { %2765 = vsyncadd [#allocation3], 4294967040 }
 0x5bb   :  { %2221 = vsyncpa [#allocation3], 1 }

</bundles_post_ra>
